<compile_context>
chip_gen: v7x
topology: tpu7x:2x2x1
jax: 0.10.0
libtpu: 0.0.40
codegen_flags: <defaults>
</compile_context>

<pallas_src>
import jax
import jax.numpy as jnp
from jax import lax
from jax.experimental import pallas as pl
from jax.experimental.pallas import tpu as pltpu


def gin_kernel(eps_ref, x_ref, adjt_ref, w1_ref, b1_ref, w2_ref, b2_ref, out_ref):
    # One block of Bt batch elements per grid step.
    bt, n, c_in = x_ref.shape
    hidden = w1_ref.shape[1]
    c_out = w2_ref.shape[1]

    x = x_ref[...]                                            # (Bt, N, C_in) f32
    # adjt[b, i, r] = adj[b, r, i]; binarize ONCE (reused by both layers) in the dtype the
    # MXU consumes for these matmuls (f32 accumulate path).
    mask_t = (adjt_ref[...] != 0).astype(jnp.float32)         # (Bt, N, N)

    # Hoisted scalars (read from SMEM once per invocation).
    eps1p = 1.0 + eps_ref[0]
    eps2p = 1.0 + eps_ref[1]
    b1 = b1_ref[...]                                          # (1, hidden)
    b2 = b2_ref[...]                                          # (1, c_out)

    # ---- GIN layer 1: agg1[b,i,:] = sum_r adj[b,r,i] * x[b,r,:] ----
    # Batched matmul contracting the LHS *last* axis (lane-friendly, no transpose).
    agg1 = lax.dot_general(mask_t, x, (((2,), (1,)), ((0,), (0,))),
                           preferred_element_type=jnp.float32)        # (Bt, N, C_in)
    h = eps1p * x + agg1
    # Flatten batch*nodes so the Linear sees Bt*N rows in one MXU pass.
    h = jnp.dot(h.reshape(bt * n, c_in), w1_ref[...],
                preferred_element_type=jnp.float32) + b1
    h = jnp.maximum(h, 0.0)                                           # ReLU
    h = h.reshape(bt, n, hidden)

    # ---- GIN layer 2 ----
    agg2 = lax.dot_general(mask_t, h, (((2,), (1,)), ((0,), (0,))),
                           preferred_element_type=jnp.float32)        # (Bt, N, hidden)
    h2 = eps2p * h + agg2
    h2 = jnp.dot(h2.reshape(bt * n, hidden), w2_ref[...],
                 preferred_element_type=jnp.float32) + b2
    h2 = h2.reshape(bt, n, c_out)

    # ---- mean over nodes -> (Bt, c_out), one store per grid step ----
    out_ref[...] = jnp.mean(h2, axis=1)


def gin_forward(x, adj, params, *, target_rows=256):
    """x: (B, N, C_in) f32, adj: (B, N, N) f32. Returns (B, c_out) f32."""
    B, N, C_in = x.shape
    w1 = params["w1"]          # (C_in, hidden)  -- pre-transposed Linear weight
    b1 = params["b1"]          # (1, hidden)
    w2 = params["w2"]          # (hidden, c_out)
    b2 = params["b2"]          # (1, c_out)
    eps = params["eps"]        # (2,) f32, in SMEM
    hidden = w1.shape[1]
    c_out = w2.shape[1]

    # Batch block: aim for ~target_rows (MXU height on v6e/v7x) rows per Linear matmul,
    # capped at B and restricted to a divisor of B so every block is full.
    # (For B=2, N=8 this collapses the whole batch into a single grid step.)
    bt = min(B, max(1, -(-target_rows // N)))
    while B % bt:
        bt -= 1
    grid_b = B // bt

    # One-time wrapper-side relayout: transpose adjacency so the in-kernel aggregation
    # contracts the LHS last axis (no in-kernel XLU transpose), and ship it as bf16 to
    # halve the DMA bytes of the dominant input (0/1 adjacency is exact in bf16).
    adj_t = jnp.swapaxes(adj, 1, 2).astype(jnp.bfloat16)

    # NOTE: at the demo shapes everything fits the default scoped VMEM easily; for large N
    # raise vmem_limit_bytes (v6e) or K-tile the adjacency with a VMEM accumulator (v7x).
    return pl.pallas_call(
        gin_kernel,
        out_shape=jax.ShapeDtypeStruct((B, c_out), jnp.float32),
        grid_spec=pltpu.PrefetchScalarGridSpec(
            num_scalar_prefetch=0,
            grid=(grid_b,),
            in_specs=[
                pl.BlockSpec(memory_space=pltpu.MemorySpace.SMEM),          # eps
                pl.BlockSpec((bt, N, C_in), lambda b: (b, 0, 0)),           # x
                pl.BlockSpec((bt, N, N), lambda b: (b, 0, 0)),              # adj^T (bf16)
                pl.BlockSpec((C_in, hidden), lambda b: (0, 0)),             # w1 (resident)
                pl.BlockSpec((1, hidden), lambda b: (0, 0)),                # b1 (resident)
                pl.BlockSpec((hidden, c_out), lambda b: (0, 0)),            # w2 (resident)
                pl.BlockSpec((1, c_out), lambda b: (0, 0)),                 # b2 (resident)
            ],
            out_specs=pl.BlockSpec((bt, c_out), lambda b: (b, 0)),
        ),
        compiler_params=pltpu.CompilerParams(
            dimension_semantics=("parallel",)),
    )(eps, x, adj_t, w1, b1, w2, b2)


def gin_reference(x, adj, params):
    """Pure-JAX f32 reference of the PyTorch forward, for sanity checking."""
    mask = (adj != 0.0).astype(jnp.float32)
    eps1, eps2 = params["eps"][0], params["eps"][1]
    agg1 = jnp.einsum("bri,brd->bid", mask, x)
    h = (1.0 + eps1) * x + agg1
    h = jnp.maximum(h @ params["w1"] + params["b1"], 0.0)
    agg2 = jnp.einsum("bri,brd->bid", mask, h)
    h2 = (1.0 + eps2) * h + agg2
    h2 = h2 @ params["w2"] + params["b2"]
    return jnp.mean(h2, axis=1)


if __name__ == "__main__":
    # Small shapes consistent with the module: GIN(c_in=C, hidden=H, c_out=2, num_of_node=N)
    B, N, C_in, HIDDEN, C_OUT = 2, 8, 16, 32, 2

    key = jax.random.PRNGKey(0)
    kx, ka, kw1, kb1, kw2, kb2 = jax.random.split(key, 6)

    x = jax.random.normal(kx, (B, N, C_in), dtype=jnp.float32)
    adj = (jax.random.uniform(ka, (B, N, N)) < 0.3).astype(jnp.float32)

    # Deterministic synthetic parameter init (nn.Linear shapes; eps init = 0.0).
    params = {
        # PyTorch Linear weight is (out, in); store pre-transposed as (in, out).
        "w1": (jax.random.normal(kw1, (C_in, HIDDEN), dtype=jnp.float32)
               * (1.0 / jnp.sqrt(C_in))),
        "b1": (jax.random.normal(kb1, (1, HIDDEN), dtype=jnp.float32)
               * (1.0 / jnp.sqrt(C_in))),
        "w2": (jax.random.normal(kw2, (HIDDEN, C_OUT), dtype=jnp.float32)
               * (1.0 / jnp.sqrt(HIDDEN))),
        "b2": (jax.random.normal(kb2, (1, C_OUT), dtype=jnp.float32)
               * (1.0 / jnp.sqrt(HIDDEN))),
        "eps": jnp.zeros((2,), dtype=jnp.float32),
    }

    out = gin_forward(x, adj, params)
    out = jax.block_until_ready(out)

    ref = gin_reference(x, adj, params)
    assert out.shape == (B, C_OUT), out.shape
    assert jnp.allclose(out, ref, atol=1e-4, rtol=1e-4), (out, ref)

    print("KERNEL_OK")
</pallas_src>

<mosaic_0001>
module attributes {stable_mosaic.version = 11 : i64} {
  func.func @gin_kernel(%arg0: i32, %arg1: memref<2xf32, #tpu.memory_space<smem>>, %arg2: memref<2x8x16xf32, #tpu.memory_space<vmem>>, %arg3: memref<2x8x8xbf16, #tpu.memory_space<vmem>>, %arg4: memref<16x32xf32, #tpu.memory_space<vmem>>, %arg5: memref<1x32xf32, #tpu.memory_space<vmem>>, %arg6: memref<32x2xf32, #tpu.memory_space<vmem>>, %arg7: memref<1x2xf32, #tpu.memory_space<vmem>>, %arg8: memref<2x2xf32, #tpu.memory_space<vmem>>) attributes {dimension_semantics = [#tpu.dimension_semantics<parallel>], iteration_bounds = array<i64: 1>, scalar_prefetch = 0 : i64, scratch_operands = 0 : i64, tpu.core_type = #tpu.core_type<tc>, window_params = [{transform_indices = @transform_0, window_bounds = array<i64: 2>}, {transform_indices = @transform_1, window_bounds = array<i64: 2, 8, 16>}, {transform_indices = @transform_2, window_bounds = array<i64: 2, 8, 8>}, {pipeline_mode = #tpu.pipeline_mode<synchronous>, transform_indices = @transform_3, window_bounds = array<i64: 16, 32>}, {pipeline_mode = #tpu.pipeline_mode<synchronous>, transform_indices = @transform_4, window_bounds = array<i64: 1, 32>}, {pipeline_mode = #tpu.pipeline_mode<synchronous>, transform_indices = @transform_5, window_bounds = array<i64: 32, 2>}, {pipeline_mode = #tpu.pipeline_mode<synchronous>, transform_indices = @transform_6, window_bounds = array<i64: 1, 2>}, {transform_indices = @transform_7, window_bounds = array<i64: 2, 2>}]} {
    %c0 = arith.constant 0 : index
    %c0_0 = arith.constant 0 : index
    %c0_1 = arith.constant 0 : index
    %0 = vector.load %arg2[%c0, %c0_0, %c0_1] : memref<2x8x16xf32, #tpu.memory_space<vmem>>, vector<2x8x16xf32>
    %c0_2 = arith.constant 0 : index
    %c0_3 = arith.constant 0 : index
    %c0_4 = arith.constant 0 : index
    %1 = vector.load %arg3[%c0_2, %c0_3, %c0_4] : memref<2x8x8xbf16, #tpu.memory_space<vmem>>, vector<2x8x8xbf16>
    %cst = arith.constant 0.000000e+00 : bf16
    %2 = vector.broadcast %cst : bf16 to vector<2x8x8xbf16>
    %3 = arith.cmpf one, %1, %2 : vector<2x8x8xbf16>
    %4 = arith.extui %3 : vector<2x8x8xi1> to vector<2x8x8xi32>
    %5 = arith.sitofp %4 : vector<2x8x8xi32> to vector<2x8x8xf32>
    %c0_5 = arith.constant 0 : index
    %6 = memref.load %arg1[%c0_5] : memref<2xf32, #tpu.memory_space<smem>>
    %cst_6 = arith.constant 1.000000e+00 : f32
    %7 = arith.addf %cst_6, %6 : f32
    %c1 = arith.constant 1 : index
    %8 = memref.load %arg1[%c1] : memref<2xf32, #tpu.memory_space<smem>>
    %cst_7 = arith.constant 1.000000e+00 : f32
    %9 = arith.addf %cst_7, %8 : f32
    %c0_8 = arith.constant 0 : index
    %c0_9 = arith.constant 0 : index
    %10 = vector.load %arg5[%c0_8, %c0_9] : memref<1x32xf32, #tpu.memory_space<vmem>>, vector<1x32xf32>
    %c0_10 = arith.constant 0 : index
    %c0_11 = arith.constant 0 : index
    %11 = vector.load %arg7[%c0_10, %c0_11] : memref<1x2xf32, #tpu.memory_space<vmem>>, vector<1x2xf32>
    %cst_12 = arith.constant dense<0.000000e+00> : vector<2x8x16xf32>
    %12 = tpu.matmul %5, %0, %cst_12 {dimension_numbers = #tpu.dot_dimension_numbers<[2], [1], [1], [2], [0, 0, 0, 1, 1, 2], [0], [0]>} : vector<2x8x8xf32>, vector<2x8x16xf32>, vector<2x8x16xf32> -> vector<2x8x16xf32>
    %13 = vector.broadcast %7 : f32 to vector<2x8x16xf32>
    %14 = arith.mulf %13, %0 : vector<2x8x16xf32>
    %15 = arith.addf %14, %12 : vector<2x8x16xf32>
    %16 = vector.shape_cast %15 : vector<2x8x16xf32> to vector<16x16xf32>
    %c0_13 = arith.constant 0 : index
    %c0_14 = arith.constant 0 : index
    %17 = vector.load %arg4[%c0_13, %c0_14] : memref<16x32xf32, #tpu.memory_space<vmem>>, vector<16x32xf32>
    %cst_15 = arith.constant dense<0.000000e+00> : vector<16x32xf32>
    %18 = tpu.matmul %16, %17, %cst_15 {dimension_numbers = #tpu.dot_dimension_numbers<[1], [0], [0], [1], [0, 0, 1, 1], [], []>} : vector<16x16xf32>, vector<16x32xf32>, vector<16x32xf32> -> vector<16x32xf32>
    %19 = vector.broadcast %10 : vector<1x32xf32> to vector<16x32xf32>
    %20 = arith.addf %18, %19 : vector<16x32xf32>
    %cst_16 = arith.constant 0.000000e+00 : f32
    %21 = vector.broadcast %cst_16 : f32 to vector<16x32xf32>
    %22 = arith.maximumf %20, %21 : vector<16x32xf32>
    %23 = vector.shape_cast %22 : vector<16x32xf32> to vector<2x8x32xf32>
    %cst_17 = arith.constant dense<0.000000e+00> : vector<2x8x32xf32>
    %24 = tpu.matmul %5, %23, %cst_17 {dimension_numbers = #tpu.dot_dimension_numbers<[2], [1], [1], [2], [0, 0, 0, 1, 1, 2], [0], [0]>} : vector<2x8x8xf32>, vector<2x8x32xf32>, vector<2x8x32xf32> -> vector<2x8x32xf32>
    %25 = vector.broadcast %9 : f32 to vector<2x8x32xf32>
    %26 = arith.mulf %25, %23 : vector<2x8x32xf32>
    %27 = arith.addf %26, %24 : vector<2x8x32xf32>
    %28 = vector.shape_cast %27 : vector<2x8x32xf32> to vector<16x32xf32>
    %c0_18 = arith.constant 0 : index
    %c0_19 = arith.constant 0 : index
    %29 = vector.load %arg6[%c0_18, %c0_19] : memref<32x2xf32, #tpu.memory_space<vmem>>, vector<32x2xf32>
    %cst_20 = arith.constant dense<0.000000e+00> : vector<16x2xf32>
    %30 = tpu.matmul %28, %29, %cst_20 {dimension_numbers = #tpu.dot_dimension_numbers<[1], [0], [0], [1], [0, 0, 1, 1], [], []>} : vector<16x32xf32>, vector<32x2xf32>, vector<16x2xf32> -> vector<16x2xf32>
    %31 = vector.broadcast %11 : vector<1x2xf32> to vector<16x2xf32>
    %32 = arith.addf %30, %31 : vector<16x2xf32>
    %33 = vector.shape_cast %32 : vector<16x2xf32> to vector<2x8x2xf32>
    %cst_21 = arith.constant dense<0.000000e+00> : vector<2x2xf32>
    %34 = vector.multi_reduction <add>, %33, %cst_21 [1] : vector<2x8x2xf32> to vector<2x2xf32>
    %cst_22 = arith.constant 8.000000e+00 : f32
    %35 = vector.broadcast %cst_22 : f32 to vector<2x2xf32>
    %36 = arith.divf %34, %35 : vector<2x2xf32>
    %c0_23 = arith.constant 0 : index
    %c0_24 = arith.constant 0 : index
    %37 = vector.load %arg8[%c0_23, %c0_24] : memref<2x2xf32, #tpu.memory_space<vmem>>, vector<2x2xf32>
    tpu.vector_store %arg8[%c0_23, %c0_24], %36 {strides = array<i32>} : memref<2x2xf32, #tpu.memory_space<vmem>>, vector<2x2xf32>,
    return
  }
  func.func @transform_0(%arg0: i32) -> i32 {
    %c0_i32 = arith.constant 0 : i32
    %c0_i32_0 = arith.constant 0 : i32
    return %c0_i32 : i32
  }
  func.func @transform_1(%arg0: i32) -> (i32, i32, i32) {
    %c0_i32 = arith.constant 0 : i32
    %c0_i32_0 = arith.constant 0 : i32
    %c0_i32_1 = arith.constant 0 : i32
    return %arg0, %c0_i32, %c0_i32_0 : i32, i32, i32
  }
  func.func @transform_2(%arg0: i32) -> (i32, i32, i32) {
    %c0_i32 = arith.constant 0 : i32
    %c0_i32_0 = arith.constant 0 : i32
    %c0_i32_1 = arith.constant 0 : i32
    return %arg0, %c0_i32, %c0_i32_0 : i32, i32, i32
  }
  func.func @transform_3(%arg0: i32) -> (i32, i32) {
    %c0_i32 = arith.constant 0 : i32
    %c0_i32_0 = arith.constant 0 : i32
    %c0_i32_1 = arith.constant 0 : i32
    return %c0_i32, %c0_i32_0 : i32, i32
  }
  func.func @transform_4(%arg0: i32) -> (i32, i32) {
    %c0_i32 = arith.constant 0 : i32
    %c0_i32_0 = arith.constant 0 : i32
    %c0_i32_1 = arith.constant 0 : i32
    return %c0_i32, %c0_i32_0 : i32, i32
  }
  func.func @transform_5(%arg0: i32) -> (i32, i32) {
    %c0_i32 = arith.constant 0 : i32
    %c0_i32_0 = arith.constant 0 : i32
    %c0_i32_1 = arith.constant 0 : i32
    return %c0_i32, %c0_i32_0 : i32, i32
  }
  func.func @transform_6(%arg0: i32) -> (i32, i32) {
    %c0_i32 = arith.constant 0 : i32
    %c0_i32_0 = arith.constant 0 : i32
    %c0_i32_1 = arith.constant 0 : i32
    return %c0_i32, %c0_i32_0 : i32, i32
  }
  func.func @transform_7(%arg0: i32) -> (i32, i32) {
    %c0_i32 = arith.constant 0 : i32
    %c0_i32_0 = arith.constant 0 : i32
    return %arg0, %c0_i32 : i32, i32
  }
}

</mosaic_0001>

<bundles_post_ra>
// kernel: tpu_custom_call.1
= control target key start
LH: loop header
LB: loop body
LE: loop exit
PB: predicated region body
PF: predicated region fallthrough
CT: control target
= control target key end

     0   :  { %12 = vsyncpa [#allocation4], 0  ;;  %s814_s0 = inlined_call_operand.vmem [shape: f32[2], index: 0, kind: input, shape index: {}]   ;;  %s815_s1 = inlined_call_operand.vmem [shape: f32[2,8,16], index: 1, kind: input, shape index: {}]   ;;  %s816_s2 = inlined_call_operand.vmem [shape: bf16[2,8,8], index: 2, kind: input, shape index: {}]   ;;  %s817_s3 = inlined_call_operand.vmem [shape: f32[16,32], index: 3, kind: input, shape index: {}]   ;;  %s818_s4 = inlined_call_operand.vmem [shape: f32[1,32], index: 4, kind: input, shape index: {}]   ;;  %s819_s5 = inlined_call_operand.vmem [shape: f32[32,2], index: 5, kind: input, shape index: {}]   ;;  %s820_s6 = inlined_call_operand.vmem [shape: f32[1,2], index: 6, kind: input, shape index: {}]   ;;  %s821_s7 = inlined_call_operand.hbm [shape: f32[2,2], index: 7, kind: output, shape index: {}]  }
   0x1   :  { %13 = vsyncpa [#allocation3], 0  ;;  %s20_s26 = sshll.u32 %s814_s0, 4  ;;  %s21_s26 = int_to_ptr.vmem [resolvable:$true] %s20_s26 }
   0x2   :  { %s672_s27 = scalar_lea.vmem %s21_s26, 16  ;;  %p677_p1 = scmp.lt.s32.totalorder %s21_s26, %s21_s26 }
   0x3   :  { %p673_p0 = scmp.ne.s32.totalorder %s21_s26, %s672_s27  ;;  %p678_p2 = scmp.lt.s32.totalorder %s672_s27, %s672_s27 }
   0x5   :  { %p679_p3 = por %p678_p2, %p677_p1 }
   0x7   :  { %p680_p4 = pnand %p679_p3, %p673_p0 }
   0x9   :  { %683 = shalt.err (!%p680_p4)
}
   0xa   :  { %s710_s28 = smov [#allocation2]  }
   0xb   :  { %23 = dma.vmem_to_smem %s21_s26, 16, %s710_s28, [#allocation4]  }
   0xc   :  { %706 = dma.done.wait [#allocation4], 16  }
   0xd   :  { %707 = vsyncadd [#allocation4], 4294967280 }
   0xe   :  { %39 = sfence }
   0xf   :  { %v43_v0 = vld [vmem:[%s815_s1] sm:$0xff]  ;;  %v44_v1 = vld [vmem:[%s815_s1 + $0x8] sm:$0xff]  ;;  %v711_v2 = vmov 0.0   ;;  %vm712_vm0 = vmmov 0   ;;  %v713_v5 = vmov 0   ;;  %vm65_vm3 = vcmask 64512  }
  0x10   :  { %617 = vmatprep.subr.mxu0 %v711_v2  ;;  %622 = vmatprep.subr.mxu1 %v711_v2  ;;  %v45_v3 = vld [vmem:[%s816_s2] sm:$0xf]  ;;  %v46_v4 = vld [vmem:[%s816_s2 + $0x4] sm:$0xf]  ;;  %v218_v13 = vld [vmem:[%s817_s3 + $0x8] sm:$0xff]  ;;  %s59_s15 = sld [smem:[#allocation2]] }
  0x11   :  { %618 = vmatpush3.msra.mxu0 %v43_v0  ;;  %619 = vmatprep.mubr.msk.f32.mxu0 %vm712_vm0, %v711_v2  ;;  %vm47_vm1 = vcmp.ne.bf16.partialorder %v45_v3, 0  ;;  %vm48_vm2 = vcmp.ne.bf16.partialorder %v46_v4, 0  ;;  %v217_v12 = vld [vmem:[%s817_s3] sm:$0xff]  ;;  %vm225_vm6 = vcmask 130048   ;;  %v455_v27 = vld [vmem:[%s819_s5 + $0x8] sm:$0xff]  ;;  %v456_v34 = vld [vmem:[%s819_s5 + $0x10] sm:$0xff] }
  0x12   :  { %623 = vmatpush3.msra.mxu1 %v44_v1  ;;  %624 = vmatprep.mubr.msk.f32.mxu1 %vm712_vm0, %v711_v2  ;;  %v49_v6 = vsel %vm47_vm1, 65537, %v713_v5  ;;  %v50_v7 = vsel %vm48_vm2, 65537, %v713_v5  ;;  %v655_v14 = vpack.c.bf16 %v218_v13, %v217_v12  ;;  %v591_v24 = vld [vmem:[%s818_s4] ss:$0 sm:$0xff]  ;;  %v457_v35 = vld [vmem:[%s819_s5 + $0x18] sm:$0xff]  ;;  %s588_s25 = sld [smem:[#allocation2 + $0x1]] }
  0x13   :  { %v51_v8 = vunpack.c.l.b16 %v49_v6  ;;  %v52_v9 = vunpack.c.l.b16 %v50_v7  ;;  %634 = vmatprep.subr.mxu1 %v711_v2  ;;  %v454_v26 = vld [vmem:[%s819_s5] sm:$0xff]  ;;  %v663_v36 = vpack.c.bf16 %v457_v35, %v456_v34  ;;  %vm464_vm7 = vcmask 261120   ;;  %s714_s5 = smov [#allocation5]  }
  0x14   :  { %656 = vmatprep.subr.bf16.mxu0 %v655_v14  ;;  %v659_v32 = vpack.c.bf16 %v455_v27, %v454_v26  ;;  %v596_v46 = vld [vmem:[%s820_s6] ss:$0 sm:$0xff]  ;;  %vm546_vm8 = vcmask 15360   ;;  %s577_s6 = sshll.u32 %s714_s5, 4  ;;  %vm566_vm9 = vcmask 1041409   ;;  %vm569_vm10 = vcmask 9216   ;;  %s578_s6 = int_to_ptr.vmem [resolvable:$true] %s577_s6 }
  0x15   :  { %vm53_vm4 = vcmp.ne.s32.totalorder %v51_v8, 0  ;;  %vm54_vm5 = vcmp.ne.s32.totalorder %v52_v9, 0  ;;  %s684_s29 = scalar_lea.vmem %s578_s6, 32  ;;  %p689_p6 = scmp.lt.s32.totalorder %s578_s6, %s578_s6 }
  0x16   :  { %v586_v10 = vsel %vm53_vm4, 1.0, %v711_v2  ;;  %v587_v11 = vsel %vm54_vm5, 1.0, %v711_v2  ;;  %s60_s16 = sadd.f32 1.0, %s59_s15  ;;  %p685_p5 = scmp.ne.s32.totalorder %s578_s6, %s684_s29 }
  0x17   :  { %620 = vmatmul.mubr.msk.f32.vlgmr.msra.gmra.mrb[0].mxu0 %vm65_vm3, %v586_v10  ;;  %625 = vmatmul.mubr.msk.f32.vlgmr.msra.gmra.mrb[0].mxu1 %vm65_vm3, %v587_v11  ;;  %p690_p7 = scmp.lt.s32.totalorder %s684_s29, %s684_s29 }
  0x18   :  { %636 = vmatprep.mubr.msk.f32.mxu1 %vm712_vm0, %v711_v2  ;;  %658 = vmatpush3.bf16.msra.mxu0 %v655_v14  ;;  %v212_v15 = vstv %s60_s16  ;;  %s62_s26 = sadd.f32 1.0, %s588_s25 }
  0x19   :  { %639 = vmatprep.subr.mxu0 %v711_v2  ;;  %v213_v16 = vmul.f32 %v212_v15, %v43_v0  ;;  %v214_v17 = vmul.f32 %v212_v15, %v44_v1  ;;  %p691_p8 = por %p690_p7, %p689_p6 }
  0x1a   :  { %v449_v37 = vstv %s62_s26 }
  0x1b   :  { %p692_p9 = pnand %p691_p8, %p685_p5 }
  0xea   :  { %v135_v18 = vpop.f32.mrb[0].mxu0  ;;  %v208_v19 = vpop.f32.mrb[0].mxu1 }
  0xeb   :  { %v215_v20 = vadd.f32 %v213_v16, %v135_v18  ;;  %v216_v21 = vadd.f32 %v214_v17, %v208_v19  ;;  %v621_v22 = vpop.f32.mrb[1].mxu0  ;;  %v626_v23 = vpop.f32.mrb[1].mxu1 }
  0xed   :  { %631 = vmatprep.mubr.msk.f32.mxu0 %vm225_vm6, %v215_v20 }
  0xee   :  { %632 = vmatmul.mubr.msk.f32.vlgmr.msra.gmra.mrb[2].mxu0 %vm225_vm6, %v216_v21 }
  0xef   :  { %641 = vmatprep.mubr.msk.f32.mxu0 %vm712_vm0, %v711_v2 }
 0x1c1   :  { %v633_v25 = vpop.f32.mrb[2].mxu0 }
 0x1c2   :  { %v304_v28 = vadd.f32 %v633_v25, %v591_v24  ;;  %v298_v29 = vpop.f32.mrb[3].mxu0 }
 0x1c3   :  { %v299_v30 = vadd.f32 %v591_v24, %v298_v29 }
 0x1c4   :  { %v308_v31 = vmax.f32 %v304_v28, 0.0 }
 0x1c5   :  { %v307_v33 = vmax.f32 %v299_v30, 0.0 }
 0x1c6   :  { %640 = vmatpush3.msra.mxu0 %v308_v31  ;;  %v451_v38 = vmul.f32 %v449_v37, %v308_v31 }
 0x1c7   :  { %635 = vmatpush3.msra.mxu1 %v307_v33  ;;  %642 = vmatmul.mubr.msk.f32.vlgmr.msra.gmra.mrb[4].mxu0 %vm65_vm3, %v587_v11  ;;  %v450_v40 = vmul.f32 %v449_v37, %v307_v33 }
 0x1c8   :  { %637 = vmatmul.mubr.msk.f32.vlgmr.msra.gmra.mrb[2].mxu1 %vm65_vm3, %v586_v10  ;;  %660 = vmatprep.subr.bf16.mxu1 %v659_v32 }
 0x1c9   :  { %662 = vmatpush3.bf16.msra.mxu1 %v659_v32 }
 0x1ca   :  { %664 = vmatprep.subr.bf16.mxu1 %v663_v36 }
 0x1cd   :  { %666 = vmatpush3.bf16.msra.mxu1 %v663_v36 }
 0x29a   :  { %v445_v39 = vpop.f32.mrb[4].mxu0 }
 0x29b   :  { %v453_v41 = vadd.f32 %v451_v38, %v445_v39  ;;  %v375_v42 = vpop.f32.mrb[2].mxu1  ;;  %v643_v43 = vpop.f32.mrb[5].mxu0 }
 0x29c   :  { %v452_v44 = vadd.f32 %v450_v40, %v375_v42  ;;  %v638_v45 = vpop.f32.mrb[3].mxu1 }
 0x29e   :  { %652 = vmatprep.mubr.msk.f32.mxu1 %vm464_vm7, %v452_v44 }
 0x29f   :  { %653 = vmatmul.mubr.msk.f32.vlgmr.msra.gmra.mrb[4].mxu1 %vm464_vm7, %v453_v41 }
 0x372   :  { %v654_v47 = vpop.f32.mrb[4].mxu1 }
 0x373   :  { %v543_v48 = vadd.f32 %v654_v47, %v596_v46  ;;  %v537_v49 = vpop.f32.mrb[5].mxu1 }
 0x374   :  { %v538_v50 = vadd.f32 %v596_v46, %v537_v49 }
 0x375   :  { %v554_v51 = vsel %vm546_vm8, %v543_v48, 0.0 }
 0x376   :  { %v555_v52 = vrot.slane %v554_v51, 4  ;;  %v547_v53 = vsel %vm546_vm8, %v538_v50, 0.0 }
 0x377   :  { %v548_v54 = vrot.slane %v547_v53, 4 }
 0x378   :  { %v556_v55 = vadd.f32 %v555_v52, %v554_v51 }
 0x379   :  { %v549_v56 = vadd.f32 %v548_v54, %v547_v53 }
 0x37a   :  { %v557_v57 = vrot.slane %v556_v55, 2 }
 0x37b   :  { %v550_v58 = vrot.slane %v549_v56, 2 }
 0x37c   :  { %v558_v59 = vadd.f32 %v557_v57, %v556_v55 }
 0x37d   :  { %v551_v60 = vadd.f32 %v550_v58, %v549_v56 }
 0x37e   :  { %v559_v61 = vrot.slane %v558_v59, 1 }
 0x37f   :  { %v552_v62 = vrot.slane %v551_v60, 1 }
 0x380   :  { %v560_v63 = vadd.f32 %v559_v61, %v558_v59 }
 0x381   :  { %v553_v0 = vadd.f32 %v552_v62, %v551_v60 }
 0x382   :  { %v563_v1 = vmul.f32 0.125, %v560_v63 }
 0x383   :  { %v562_v2 = vmul.f32 0.125, %v553_v0 }
 0x385   :  { %v567_v3 = vsel %vm566_vm9, %v563_v1, %v562_v2 }
 0x386   :  { %570 = vst.msk [vmem:[#allocation5] sm:$0x3] %vm569_vm10, %v567_v3 }
 0x387   :  { %695 = shalt.err (!%p692_p9)
}
 0x388   :  { %s696_s9 = scalar_lea.hbm %s821_s7, 32 }
 0x389   :  { %p697_p10 = scmp.ne.s32.totalorder %s821_s7, %s696_s9  ;;  %p700_p11 = scmp.lt.u32.totalorder %s696_s9, %s821_s7 }
 0x38b   :  { %p702_p12 = pnand %p700_p11, %p697_p10 }
 0x38d   :  { %705 = shalt.err (!%p702_p12)
}
 0x38e   :  { %580 = dma.vmem_to_hbm [thread:$0]  %s578_s6, 32, %s821_s7, [#allocation3]  }
 0x38f   :  { %708 = dma.done.wait [#allocation3], 32  }
 0x390   :  { %709 = vsyncadd [#allocation3], 4294967264 }
 0x391   :  { %584 = vsyncpa [#allocation3], 1 }
 0x392   :  { %585 = vsyncpa [#allocation4], 1 }

</bundles_post_ra>
